<compile_context>
chip_gen: v7x
topology: tpu7x:2x2x1
jax: 0.10.0
libtpu: 0.0.40
codegen_flags: <defaults>
</compile_context>

<pallas_src>
import functools

import jax
import jax.numpy as jnp
from jax import lax
from jax.experimental import pallas as pl
from jax.experimental.pallas import tpu as pltpu


_VMEM_LIMIT_BYTES = 32 * 1024 * 1024   # safe scoped limit on v5e/v6e (128 MiB) and v7x (64 MiB)
_VMEM_TILE_BUDGET = 20 * 1024 * 1024   # per-grid-step working-set target
_HALO = 128                             # left/right halo width (one 128-lane block)


def _auto_tile_l(cin, cout, k, stride, fold_taps):
    """Largest Lout tile (multiple of 128) whose per-step footprint fits the budget."""
    for cand in (1024, 512, 256, 128):
        tile_in = cand * stride
        est = 2 * cin * tile_in * 4            # centre input block, f32, double buffered
        est += 2 * 2 * cin * _HALO * 4         # left/right halo blocks, double buffered
        est += 2 * cout * cand * 2             # bf16 conv-out tile, double buffered
        est += cin * (tile_in + 2 * _HALO) * 2  # xw window temp (bf16)
        est += cout * cand * 4                 # f32 accumulator temp
        if fold_taps:
            est += k * cin * cand * 2          # im2col temp
            est += 2 * cout * k * cin * 2      # folded (Cout, K*Cin) weights
        else:
            est += 2 * k * cout * cin * 2      # (K, Cout, Cin) weights
        if int(1.5 * est) <= _VMEM_TILE_BUDGET:
            return cand
    return 128


# ----------------------------------------------------------------------------
# Kernel 1a: Conv1d tile (multi-tile path) + fused per-channel BN partial sums
# ----------------------------------------------------------------------------
def _conv1d_stats_kernel(xl_ref, xc_ref, xr_ref, w_ref, b_ref, y_ref, stats_ref, *,
                         K, stride, pad, tile_l, l_in, l_out, fold_taps):
    # xl_ref/xr_ref : (1, Cin, 128)      f32  left/right halo blocks (unpadded x)
    # xc_ref        : (1, Cin, TILE_IN)  f32  centre input block
    # w_ref         : (Cout, K*Cin) or (K, Cout, Cin)  bf16
    # b_ref         : (Cout, 1)          f32
    # y_ref         : (1, Cout, TILE_L)  bf16 conv output tile (lane dense)
    # stats_ref     : (1, Cout, 2)       f32  [sum, sum_sq], accumulated over l
    l_idx = pl.program_id(1)
    tile_in = tile_l * stride
    base = l_idx * tile_in

    lane_h = lax.broadcasted_iota(jnp.int32, (1, _HALO), 1)
    lane_c = lax.broadcasted_iota(jnp.int32, (1, tile_in), 1)

    # Left halo: positions < 0 are the conv's implicit left zero padding (l==0).
    xl = jnp.where(base - _HALO + lane_h >= 0, xl_ref[0], 0.0).astype(jnp.bfloat16)
    # Centre / right halo: positions >= L are the implicit right zero padding
    # (also covers undefined lanes of partial edge blocks).
    xc = jnp.where(base + lane_c < l_in, xc_ref[0], 0.0).astype(jnp.bfloat16)
    xr = jnp.where(base + tile_in + lane_h < l_in, xr_ref[0], 0.0).astype(jnp.bfloat16)
    xw = jnp.concatenate([xl, xc, xr], axis=-1)            # (Cin, TILE_IN + 256)

    off0 = _HALO - pad
    span = (tile_l - 1) * stride + 1

    def tap(k):
        if stride == 1:
            return xw[:, off0 + k: off0 + k + tile_l]
        # TODO(synk): de-interleave strided lanes once per tile instead of per tap.
        return xw[:, off0 + k: off0 + k + span: stride]

    if fold_taps:
        # Small Cin: fold K into the contraction depth to fill the MXU.
        xcol = jnp.concatenate([tap(k) for k in range(K)], axis=0)   # (K*Cin, TILE_L)
        y = jnp.dot(w_ref[...], xcol, preferred_element_type=jnp.float32)
    else:
        # Large Cin: K accumulated matmuls, no im2col temp.
        y = jnp.dot(w_ref[0], tap(0), preferred_element_type=jnp.float32)
        for k in range(1, K):
            y = y + jnp.dot(w_ref[k], tap(k), preferred_element_type=jnp.float32)
    y = y + b_ref[...]                                      # (Cout, TILE_L) f32

    # bf16 intermediate halves HBM traffic; stats stay in f32.
    y_ref[0] = y.astype(y_ref.dtype)

    lane_o = lax.broadcasted_iota(jnp.int32, (1, tile_l), 1)
    ym = jnp.where(l_idx * tile_l + lane_o < l_out, y, 0.0)
    s1 = jnp.sum(ym, axis=-1, keepdims=True)
    s2 = jnp.sum(ym * ym, axis=-1, keepdims=True)

    @pl.when(l_idx == 0)
    def _():
        stats_ref[...] = jnp.zeros_like(stats_ref)
    stats_ref[0] += jnp.concatenate([s1, s2], axis=-1)      # resident accumulator


# ----------------------------------------------------------------------------
# Kernel 1b: Conv1d (single-tile path, whole L in one block)
# ----------------------------------------------------------------------------
def _conv1d_stats_small_kernel(x_ref, w_ref, b_ref, y_ref, stats_ref, *,
                               K, stride, pad, pad_r, tile_l, fold_taps):
    x = x_ref[0].astype(jnp.bfloat16)                       # (Cin, L)
    parts = []
    if pad:
        parts.append(jnp.zeros((x.shape[0], pad), jnp.bfloat16))
    parts.append(x)
    if pad_r:
        parts.append(jnp.zeros((x.shape[0], pad_r), jnp.bfloat16))
    xw = jnp.concatenate(parts, axis=-1) if len(parts) > 1 else x
    span = (tile_l - 1) * stride + 1

    def tap(k):
        if stride == 1:
            return xw[:, k: k + tile_l]
        return xw[:, k: k + span: stride]

    if fold_taps:
        xcol = jnp.concatenate([tap(k) for k in range(K)], axis=0)
        y = jnp.dot(w_ref[...], xcol, preferred_element_type=jnp.float32)
    else:
        y = jnp.dot(w_ref[0], tap(0), preferred_element_type=jnp.float32)
        for k in range(1, K):
            y = y + jnp.dot(w_ref[k], tap(k), preferred_element_type=jnp.float32)
    y = y + b_ref[...]

    y_ref[0] = y.astype(y_ref.dtype)
    s1 = jnp.sum(y, axis=-1, keepdims=True)
    s2 = jnp.sum(y * y, axis=-1, keepdims=True)
    stats_ref[0] = jnp.concatenate([s1, s2], axis=-1)


# ----------------------------------------------------------------------------
# Kernel 2: BatchNorm apply (precomputed per-channel scale/shift) + SiLU
# ----------------------------------------------------------------------------
def _bn_silu_kernel(y_ref, scale_ref, shift_ref, o_ref):
    z = y_ref[0].astype(jnp.float32) * scale_ref[...] + shift_ref[...]
    # SiLU: z * sigmoid(z); reciprocal goes to the EUP slot.
    o_ref[0] = (z * pl.reciprocal(1.0 + jnp.exp(-z), approx=True)).astype(o_ref.dtype)


# ----------------------------------------------------------------------------
# Wrapper
# ----------------------------------------------------------------------------
def basic_conv_forward(x_ncl, weight_oik, bias_o, gamma_o, beta_o, *,
                       stride=1, eps=1e-5, tile_l=None, out_dtype=jnp.float32):
    """Forward pass of BasicConv (Conv1d + train-mode BatchNorm1d + SiLU).

    x_ncl     : (N, Cin, L)      PyTorch NCL layout (f32)
    weight_oik: (Cout, Cin, K)   PyTorch Conv1d weight layout
    bias_o, gamma_o, beta_o : (Cout,)
    returns   : (N, Cout, Lout)  NCL
    """
    N, Cin, L = x_ncl.shape
    Cout, _, K = weight_oik.shape
    pad = (K - 1) // 2
    Lout = (L + 2 * pad - K) // stride + 1

    # TODO(synk): channel padding (Cin->mult of 16, Cout->mult of 8) is left to
    # the caller to avoid an extra HBM pass over x.
    fold_taps = Cin < 128
    if fold_taps:
        # (Cout, K*Cin), k-major / cin-minor, matches the im2col stack order.
        w_arg = jnp.transpose(weight_oik, (0, 2, 1)).reshape(Cout, K * Cin)
        w_arg = w_arg.astype(jnp.bfloat16)
        w_block = (Cout, K * Cin)
        w_index = lambda n, l: (0, 0)
    else:
        w_arg = jnp.transpose(weight_oik, (2, 0, 1)).astype(jnp.bfloat16)  # (K, Cout, Cin)
        w_block = (K, Cout, Cin)
        w_index = lambda n, l: (0, 0, 0)
    b_arg = bias_o.reshape(Cout, 1).astype(jnp.float32)

    TILE_L = tile_l if tile_l is not None else _auto_tile_l(Cin, Cout, K, stride, fold_taps)
    single_tile = Lout <= TILE_L

    if single_tile:
        TILE_L = Lout
        num_l = 1
        pad_r = max((Lout - 1) * stride + K - pad - L, 0)
        conv_out, stats = pl.pallas_call(
            functools.partial(_conv1d_stats_small_kernel, K=K, stride=stride,
                              pad=pad, pad_r=pad_r, tile_l=TILE_L,
                              fold_taps=fold_taps),
            out_shape=(jax.ShapeDtypeStruct((N, Cout, Lout), jnp.bfloat16),
                       jax.ShapeDtypeStruct((N, Cout, 2), jnp.float32)),
            grid=(N, 1),
            in_specs=[pl.BlockSpec((1, Cin, L), lambda n, l: (n, 0, 0)),
                      pl.BlockSpec(w_block, w_index),
                      pl.BlockSpec((Cout, 1), lambda n, l: (0, 0))],
            out_specs=(pl.BlockSpec((1, Cout, Lout), lambda n, l: (n, 0, 0)),
                       pl.BlockSpec((1, Cout, 2), lambda n, l: (n, 0, 0))),
            compiler_params=pltpu.CompilerParams(
                dimension_semantics=("parallel", "arbitrary"),
                vmem_limit_bytes=_VMEM_LIMIT_BYTES),
        )(x_ncl, w_arg, b_arg)
    else:
        assert TILE_L % 128 == 0, "tile_l must be a multiple of 128"
        assert pad <= _HALO, "kernel_size too large for the 128-lane left halo"
        assert K - stride - pad <= _HALO, "kernel_size too large for the 128-lane right halo"
        TILE_IN = TILE_L * stride
        num_l = -(-Lout // TILE_L)
        hb = TILE_IN // _HALO
        lblk_max = -(-L // _HALO) - 1

        conv_out, stats = pl.pallas_call(
            functools.partial(_conv1d_stats_kernel, K=K, stride=stride, pad=pad,
                              tile_l=TILE_L, l_in=L, l_out=Lout,
                              fold_taps=fold_taps),
            out_shape=(jax.ShapeDtypeStruct((N, Cout, Lout), jnp.bfloat16),
                       jax.ShapeDtypeStruct((N, Cout, 2), jnp.float32)),
            grid=(N, num_l),
            in_specs=[
                pl.BlockSpec((1, Cin, _HALO),
                             lambda n, l: (n, 0, jnp.maximum(l * hb - 1, 0))),
                pl.BlockSpec((1, Cin, TILE_IN), lambda n, l: (n, 0, l)),
                pl.BlockSpec((1, Cin, _HALO),
                             lambda n, l: (n, 0, jnp.minimum((l + 1) * hb, lblk_max))),
                pl.BlockSpec(w_block, w_index),
                pl.BlockSpec((Cout, 1), lambda n, l: (0, 0)),
            ],
            out_specs=(pl.BlockSpec((1, Cout, TILE_L), lambda n, l: (n, 0, l)),
                       pl.BlockSpec((1, Cout, 2), lambda n, l: (n, 0, 0))),
            compiler_params=pltpu.CompilerParams(
                dimension_semantics=("parallel", "arbitrary"),
                vmem_limit_bytes=_VMEM_LIMIT_BYTES),
        )(x_ncl, x_ncl, x_ncl, w_arg, b_arg)

    # Finalize BN batch statistics (tiny: (N, Cout, 2) -> per-channel scale/shift).
    totals = jnp.sum(stats, axis=0)                          # (Cout, 2)
    count = float(N * Lout)
    mean = totals[:, 0] / count
    var = jnp.maximum(totals[:, 1] / count - mean * mean, 0.0)  # biased (BN train mode)
    inv = lax.rsqrt(var + eps)
    g = gamma_o.astype(jnp.float32)
    scale = (g * inv).reshape(Cout, 1)
    shift = (beta_o.astype(jnp.float32) - mean * g * inv).reshape(Cout, 1)

    out = pl.pallas_call(
        _bn_silu_kernel,
        out_shape=jax.ShapeDtypeStruct((N, Cout, Lout), out_dtype),
        grid=(N, num_l),
        in_specs=[pl.BlockSpec((1, Cout, TILE_L), lambda n, l: (n, 0, l)),
                  pl.BlockSpec((Cout, 1), lambda n, l: (0, 0)),
                  pl.BlockSpec((Cout, 1), lambda n, l: (0, 0))],
        out_specs=pl.BlockSpec((1, Cout, TILE_L), lambda n, l: (n, 0, l)),
        compiler_params=pltpu.CompilerParams(
            dimension_semantics=("parallel", "parallel"),
            vmem_limit_bytes=_VMEM_LIMIT_BYTES),
    )(conv_out, scale, shift)

    return out  # NCL: (N, Cout, Lout)


# ----------------------------------------------------------------------------
# Deterministic parameter init (mirrors BasicConv.initialize())
# ----------------------------------------------------------------------------
def init_basic_conv_params(key, in_channels, out_channels, kernel_size):
    fan_out = out_channels * kernel_size         # kaiming_normal_, mode='fan_out', relu
    std = (2.0 / fan_out) ** 0.5
    weight = std * jax.random.normal(
        key, (out_channels, in_channels, kernel_size), dtype=jnp.float32)
    bias = jnp.zeros((out_channels,), jnp.float32)
    gamma = jnp.ones((out_channels,), jnp.float32)
    beta = jnp.zeros((out_channels,), jnp.float32)
    return weight, bias, gamma, beta


# ----------------------------------------------------------------------------
# Pure-JAX reference (f32, for correctness check)
# ----------------------------------------------------------------------------
def basic_conv_reference(x_ncl, weight_oik, bias_o, gamma_o, beta_o,
                         *, stride=1, eps=1e-5):
    K = weight_oik.shape[-1]
    pad = (K - 1) // 2
    y = lax.conv_general_dilated(
        x_ncl.astype(jnp.float32), weight_oik.astype(jnp.float32),
        window_strides=(stride,), padding=[(pad, pad)],
        dimension_numbers=("NCH", "OIH", "NCH"))
    y = y + bias_o[None, :, None]
    mean = jnp.mean(y, axis=(0, 2), keepdims=True)
    var = jnp.var(y, axis=(0, 2), keepdims=True)
    z = (y - mean) / jnp.sqrt(var + eps)
    z = z * gamma_o[None, :, None] + beta_o[None, :, None]
    return z * jax.nn.sigmoid(z)


if __name__ == "__main__":
    key = jax.random.PRNGKey(0)
    k_w, k_x, k_x2, k_w3, k_x3, k_p3 = jax.random.split(key, 6)

    # --- test 1: small single-tile path (batch=2, Cin=4, Cout=8, L=16, K=3) ---
    N, Cin, Cout, L, K = 2, 4, 8, 16, 3
    weight, bias, gamma, beta = init_basic_conv_params(k_w, Cin, Cout, K)
    x = jax.random.normal(k_x, (N, Cin, L), dtype=jnp.float32)
    out = jax.block_until_ready(basic_conv_forward(x, weight, bias, gamma, beta))
    ref = basic_conv_reference(x, weight, bias, gamma, beta)
    assert out.shape == (N, Cout, L), out.shape
    err = float(jnp.max(jnp.abs(out - ref)))
    assert err < 5e-2, f"single-tile max abs diff = {err}"

    # --- test 2: multi-tile path (in-kernel halo/padding + partial last tile) ---
    L2 = 600
    x2 = jax.random.normal(k_x2, (N, Cin, L2), dtype=jnp.float32)
    out2 = jax.block_until_ready(
        basic_conv_forward(x2, weight, bias, gamma, beta, tile_l=128))
    ref2 = basic_conv_reference(x2, weight, bias, gamma, beta)
    assert out2.shape == (N, Cout, L2), out2.shape
    err2 = float(jnp.max(jnp.abs(out2 - ref2)))
    assert err2 < 5e-2, f"multi-tile max abs diff = {err2}"

    # --- test 3: large-Cin path (per-tap accumulated MXU matmuls, no im2col) ---
    Cin3, Cout3, L3 = 128, 16, 384
    weight3, _, _, _ = init_basic_conv_params(k_w3, Cin3, Cout3, K)
    pk = jax.random.split(k_p3, 3)
    bias3 = 0.1 * jax.random.normal(pk[0], (Cout3,), dtype=jnp.float32)
    gamma3 = 1.0 + 0.1 * jax.random.normal(pk[1], (Cout3,), dtype=jnp.float32)
    beta3 = 0.1 * jax.random.normal(pk[2], (Cout3,), dtype=jnp.float32)
    x3 = jax.random.normal(k_x3, (N, Cin3, L3), dtype=jnp.float32)
    out3 = jax.block_until_ready(
        basic_conv_forward(x3, weight3, bias3, gamma3, beta3, tile_l=128))
    ref3 = basic_conv_reference(x3, weight3, bias3, gamma3, beta3)
    assert out3.shape == (N, Cout3, L3), out3.shape
    err3 = float(jnp.max(jnp.abs(out3 - ref3)))
    assert err3 < 5e-2, f"large-Cin max abs diff = {err3}"

    print("KERNEL_OK")
</pallas_src>

<mosaic_0001>
module attributes {stable_mosaic.version = 11 : i64} {
  func.func @_conv1d_stats_small_kernel(%arg0: i32, %arg1: i32, %arg2: memref<1x4x16xf32, #tpu.memory_space<vmem>>, %arg3: memref<8x12xbf16, #tpu.memory_space<vmem>>, %arg4: memref<8x1xf32, #tpu.memory_space<vmem>>, %arg5: memref<1x8x16xbf16, #tpu.memory_space<vmem>>, %arg6: memref<1x8x2xf32, #tpu.memory_space<vmem>>) attributes {dimension_semantics = [#tpu.dimension_semantics<parallel>, #tpu.dimension_semantics<arbitrary>], iteration_bounds = array<i64: 2, 1>, scalar_prefetch = 0 : i64, scratch_operands = 0 : i64, tpu.core_type = #tpu.core_type<tc>, window_params = [{transform_indices = @transform_0, window_bounds = array<i64: 1, 4, 16>}, {pipeline_mode = #tpu.pipeline_mode<synchronous>, transform_indices = @transform_1, window_bounds = array<i64: 8, 12>}, {pipeline_mode = #tpu.pipeline_mode<synchronous>, transform_indices = @transform_2, window_bounds = array<i64: 8, 1>}, {transform_indices = @transform_3, window_bounds = array<i64: 1, 8, 16>}, {transform_indices = @transform_4, window_bounds = array<i64: 1, 8, 2>}]} {
    %c0 = arith.constant 0 : index
    %c0_0 = arith.constant 0 : index
    %c0_1 = arith.constant 0 : index
    %0 = vector.load %arg2[%c0, %c0_0, %c0_1] : memref<1x4x16xf32, #tpu.memory_space<vmem>>, vector<1x4x16xf32>
    %1 = vector.shape_cast %0 : vector<1x4x16xf32> to vector<4x16xf32>
    %2 = arith.truncf %1 : vector<4x16xf32> to vector<4x16xbf16>
    %cst = arith.constant 0.000000e+00 : bf16
    %3 = vector.broadcast %cst : bf16 to vector<4x1xbf16>
    %cst_2 = arith.constant 0.000000e+00 : bf16
    %4 = vector.broadcast %cst_2 : bf16 to vector<4x1xbf16>
    %5 = tpu.concatenate %3, %2, %4 in 1 : vector<4x1xbf16>, vector<4x16xbf16>, vector<4x1xbf16> -> vector<4x18xbf16>
    %6 = vector.extract_strided_slice %5 {offsets = [0, 0], sizes = [4, 16], strides = [1, 1]} : vector<4x18xbf16> to vector<4x16xbf16>
    %7 = vector.extract_strided_slice %5 {offsets = [0, 1], sizes = [4, 16], strides = [1, 1]} : vector<4x18xbf16> to vector<4x16xbf16>
    %8 = vector.extract_strided_slice %5 {offsets = [0, 2], sizes = [4, 16], strides = [1, 1]} : vector<4x18xbf16> to vector<4x16xbf16>
    %9 = tpu.concatenate %6, %7, %8 in 0 : vector<4x16xbf16>, vector<4x16xbf16>, vector<4x16xbf16> -> vector<12x16xbf16>
    %c0_3 = arith.constant 0 : index
    %c0_4 = arith.constant 0 : index
    %10 = vector.load %arg3[%c0_3, %c0_4] : memref<8x12xbf16, #tpu.memory_space<vmem>>, vector<8x12xbf16>
    %cst_5 = arith.constant dense<0.000000e+00> : vector<8x16xf32>
    %11 = tpu.matmul %10, %9, %cst_5 {dimension_numbers = #tpu.dot_dimension_numbers<[1], [0], [0], [1], [0, 0, 1, 1], [], []>} : vector<8x12xbf16>, vector<12x16xbf16>, vector<8x16xf32> -> vector<8x16xf32>
    %c0_6 = arith.constant 0 : index
    %c0_7 = arith.constant 0 : index
    %12 = vector.load %arg4[%c0_6, %c0_7] : memref<8x1xf32, #tpu.memory_space<vmem>>, vector<8x1xf32>
    %13 = vector.broadcast %12 : vector<8x1xf32> to vector<8x16xf32>
    %14 = arith.addf %11, %13 : vector<8x16xf32>
    %15 = arith.truncf %14 : vector<8x16xf32> to vector<8x16xbf16>
    %c0_8 = arith.constant 0 : index
    %c0_9 = arith.constant 0 : index
    %c0_10 = arith.constant 0 : index
    %16 = vector.load %arg5[%c0_8, %c0_9, %c0_10] : memref<1x8x16xbf16, #tpu.memory_space<vmem>>, vector<1x8x16xbf16>
    %17 = vector.shape_cast %16 : vector<1x8x16xbf16> to vector<8x16xbf16>
    %18 = vector.shape_cast %15 : vector<8x16xbf16> to vector<1x8x16xbf16>
    tpu.vector_store %arg5[%c0_8, %c0_9, %c0_10], %18 {strides = array<i32>} : memref<1x8x16xbf16, #tpu.memory_space<vmem>>, vector<1x8x16xbf16>,
    %cst_11 = arith.constant dense<0.000000e+00> : vector<8xf32>
    %19 = vector.multi_reduction <add>, %14, %cst_11 [1] : vector<8x16xf32> to vector<8xf32>
    %20 = vector.shape_cast %19 : vector<8xf32> to vector<8x1xf32>
    %21 = arith.mulf %14, %14 : vector<8x16xf32>
    %cst_12 = arith.constant dense<0.000000e+00> : vector<8xf32>
    %22 = vector.multi_reduction <add>, %21, %cst_12 [1] : vector<8x16xf32> to vector<8xf32>
    %23 = vector.shape_cast %22 : vector<8xf32> to vector<8x1xf32>
    %24 = tpu.concatenate %20, %23 in 1 : vector<8x1xf32>, vector<8x1xf32> -> vector<8x2xf32>
    %c0_13 = arith.constant 0 : index
    %c0_14 = arith.constant 0 : index
    %c0_15 = arith.constant 0 : index
    %25 = vector.load %arg6[%c0_13, %c0_14, %c0_15] : memref<1x8x2xf32, #tpu.memory_space<vmem>>, vector<1x8x2xf32>
    %26 = vector.shape_cast %25 : vector<1x8x2xf32> to vector<8x2xf32>
    %27 = vector.shape_cast %24 : vector<8x2xf32> to vector<1x8x2xf32>
    tpu.vector_store %arg6[%c0_13, %c0_14, %c0_15], %27 {strides = array<i32>} : memref<1x8x2xf32, #tpu.memory_space<vmem>>, vector<1x8x2xf32>,
    return
  }
  func.func @transform_0(%arg0: i32, %arg1: i32) -> (i32, i32, i32) {
    %c0_i32 = arith.constant 0 : i32
    %c0_i32_0 = arith.constant 0 : i32
    %c0_i32_1 = arith.constant 0 : i32
    return %arg0, %c0_i32, %c0_i32_0 : i32, i32, i32
  }
  func.func @transform_1(%arg0: i32, %arg1: i32) -> (i32, i32) {
    %c0_i32 = arith.constant 0 : i32
    %c0_i32_0 = arith.constant 0 : i32
    %c0_i32_1 = arith.constant 0 : i32
    return %c0_i32, %c0_i32_0 : i32, i32
  }
  func.func @transform_2(%arg0: i32, %arg1: i32) -> (i32, i32) {
    %c0_i32 = arith.constant 0 : i32
    %c0_i32_0 = arith.constant 0 : i32
    %c0_i32_1 = arith.constant 0 : i32
    return %c0_i32, %c0_i32_0 : i32, i32
  }
  func.func @transform_3(%arg0: i32, %arg1: i32) -> (i32, i32, i32) {
    %c0_i32 = arith.constant 0 : i32
    %c0_i32_0 = arith.constant 0 : i32
    %c0_i32_1 = arith.constant 0 : i32
    return %arg0, %c0_i32, %c0_i32_0 : i32, i32, i32
  }
  func.func @transform_4(%arg0: i32, %arg1: i32) -> (i32, i32, i32) {
    %c0_i32 = arith.constant 0 : i32
    %c0_i32_0 = arith.constant 0 : i32
    %c0_i32_1 = arith.constant 0 : i32
    return %arg0, %c0_i32, %c0_i32_0 : i32, i32, i32
  }
}

</mosaic_0001>

<bundles_post_ra>
// kernel: tpu_custom_call.1
= control target key start
LH: loop header
LB: loop body
LE: loop exit
PB: predicated region body
PF: predicated region fallthrough
CT: control target
= control target key end

     0   :  { %10 = vsyncpa [#allocation3], 0  ;;  %s735_s0 = inlined_call_operand.vmem [shape: f32[2,4,16], index: 0, kind: input, shape index: {}]   ;;  %s736_s1 = inlined_call_operand.vmem [shape: bf16[8,12], index: 1, kind: input, shape index: {}]   ;;  %s737_s2 = inlined_call_operand.vmem [shape: f32[8,1], index: 2, kind: input, shape index: {}]   ;;  %s738_s3 = inlined_call_operand.hbm [shape: bf16[2,8,16], index: 3, kind: output, shape index: {0}]   ;;  %s739_s4 = inlined_call_operand.vmem [shape: f32[2,8,2], index: 4, kind: output, shape index: {1}]  }
   0x1   :  { %12 = vsyncpa [#allocation3 + $0x1], 0  ;;  %s614_s15 = smov 0   ;;  %s616_s16 = smov 0  }
   0x2   :  { %s618_s17 = smov 0   ;;  %s620_s18 = smov 0  }
   0x3   :  { %s622_s19 = smov 0   ;;  %s624_s20 = smov 0  }
   0x4 LB: > { %s418_s21 = sadd.s32 4294967295, %s580_s20   ;;  %s419_s22 = sadd.s32 4294967294, %s580_s20   ;;  %s580_s20 = sphi %s624_s20, %s18_s20   ;;  %s576_s19 = sphi %s622_s19, %s746_s19   ;;  %s572_s18 = sphi %s620_s18, %s745_s18   ;;  %s568_s17 = sphi %s618_s17, %s744_s17   ;;  %s564_s16 = sphi %s616_s16, %s743_s16   ;;  %s560_s15 = sphi %s614_s15, %s742_s15  }
   0x5   : > { %s30_s23 = sadd.s32 1, %s576_s19  ;;  %s105_s24 = sadd.s32 1, %s568_s17 }
   0x6   : > { %p32_p0 = scmp.ge.s32.totalorder %s30_s23, 2  ;;  %p115_p1 = scmp.ne.s32.totalorder %s568_s17, %s564_s16 }
   0x7   : > { %p116_p2 = scmp.eq.s32.totalorder %s418_s21, 1  ;;  %p121_p3 = scmp.ne.s32.totalorder %s564_s16, %s560_s15 }
   0x8   : > { %s748_s23 = smov (%p32_p0, %s30_s23), 0  ;;  %p122_p5 = scmp.eq.s32.totalorder %s419_s22, 1 }
   0x9   : > { %p654_p4 = por %p116_p2, %p115_p1  ;;  %s102_s26 = ssub.s32 %s576_s19, %s748_s23 }
   0xa   : > { %p422_p6 = scmp.ge.s32.totalorder %s580_s20, 1  ;;  %p103_p7 = scmp.eq.s32.totalorder %s102_s26, 0 }
   0xb   : > { %p661_p8 = por %p122_p5, %p121_p3  ;;  %p179_p9 = scmp.lt.s32.totalorder %s580_s20, 3 }
   0xc   : > { %s667_s28 = scalar_select %p103_p7, %s568_s17, %s105_s24  }
   0xd   : > { %p180_p10 = pnand %p422_p6, %p179_p9 }
   0xe   : > { %p208_p11 = scmp.lt.s32.totalorder (!%p180_p10), %s572_s18, 1  ;;  %s582_s8 = smov (!%p180_p10), 1   ;;  %v583_v2 = vmov (!%p180_p10), 0.0   ;;  %vm584_vm0 = vmmov (!%p180_p10), 0   ;;  %vm222_vm1 = vcmask (!%p180_p10), 7168   ;;  %vm226_vm2 = vcmask (!%p180_p10), 138240  }
   0xf   : > { %183 = sbr.rel (%p180_p10) target bundleno = 630 (0x276), region = 32  ;;  %433 = vmatprep.subr.bf16.mxu0 (!%p180_p10), %v583_v2  ;;  %435 = vmatprep.mubr.msk.bf16.mxu0 (!%p180_p10), %vm584_vm0, %v583_v2  ;;  %v585_v3 = vmov (!%p180_p10), 0   ;;  %s586_s9 = smov (!%p180_p10), 126   ;;  %v242_v9 = vld [vmem:[%s737_s2] sm:$0xff] (!%p180_p10)  ;;  %vm235_vm3 = vcmask (!%p180_p10), 1041408   ;;  %vm238_vm4 = vcmask (!%p180_p10), 1043456  }
  0x10   : > { %500 = vset.pattern.permute.xlu1 (!%p180_p10), %v585_v3  ;;  %501 = vset.pattern.permute.xlu0 (!%p180_p10), %v585_v3  ;;  %s587_s10 = smov (!%p180_p10), 127   ;;  %vm252_vm5 = vcmask (!%p180_p10), 1045504   ;;  %v241_v15 = vld [vmem:[%s736_s1] sm:$0xf] (!%p180_p10)  ;;  %vm248_vm6 = vcmask (!%p180_p10), 97280   ;;  %s199_s21 = sand.u32 (!%p180_p10), 1, %s564_s16  }
  0x11   : > { %s423_s22 = sshll.u32 (!%p180_p10), %s199_s21, 2  ;;  %vm298_vm7 = vcmask (!%p180_p10), 130048   ;;  %vm296_vm8 = vcmask (!%p180_p10), 125952   ;;  %s428_s26 = sshll.u32 (!%p180_p10), %s572_s18, 6 }
  0x12   : > { %s201_s24 = scalar_lea.vmem (!%p180_p10), [#allocation2], %s423_s22 }
  0x16   : > { %s671_s29 = scalar_select %p208_p11, %s572_s18, 1 }
  0x18   : > { %s424_s30 = sshll.u32 %s671_s29, 2 }
  0x19   : > { %s211_s7 = scalar_lea.vmem %s735_s0, %s424_s30  ;;  %s327_s30 = sshll.u32 %s201_s24, 4  ;;  %s328_s30 = int_to_ptr.vmem [resolvable:$true] %s327_s30 }
  0x1a   : > { %v217_v0 = vld [vmem:[%s211_s7] sm:$0xf]  ;;  %s689_s7 = scalar_lea.hbm %s738_s3, %s428_s26 }
  0x1b   : > { %v218_v1 = vpack.c.bf16 %v217_v0, %v217_v0 }
  0x1d   : > { %220 = vrot.lane.b32.xlu0 %v218_v1, %s582_s8  ;;  %s310_s8 = scalar_lea.sflag [#allocation3], %s199_s21 }
  0x8f   : > { %v221_v4 = vpop.permute.xlu0 %220 }
  0x90   : > { %v225_v5 = vsel %vm222_vm1, 0, %v221_v4 }
  0x91   : > { %v227_v6 = vsel %vm226_vm2, %v225_v5, 0 }
  0x92   : > { %v229_v7 = vrot.slane %v227_v6, 6  ;;  %v232_v8 = vrot.slane %v227_v6, 4 }
  0x94   : > { %233 = vrot.lane.b32.xlu1 %v232_v8, %s586_s9  ;;  %230 = vrot.lane.b32.xlu0 %v229_v7, %s587_s10  ;;  %s502_s9 = scalar_lea.vmem %s328_s30, 64  ;;  %s588_s10 = smov [#allocation2]  }
  0x95   : > { %p503_p12 = scmp.ne.s32.totalorder %s328_s30, %s502_s9  ;;  %s506_s11 = sshll.u32 %s588_s10, 4  ;;  %s507_s11 = int_to_ptr.vmem [resolvable:$false] %s506_s11 }
  0x96   : > { %s508_s12 = scalar_lea.vmem %s507_s11, 128  ;;  %p509_p1 = scmp.lt.s32.totalorder %s328_s30, %s507_s11 }
  0x97   : > { %p504_p13 = pnand %p503_p12, %p654_p4  ;;  %p510_p2 = scmp.lt.s32.totalorder %s508_s12, %s502_s9 }
  0x98   : > { %245 = vperm.xlu1 %500, %v242_v9  }
  0x99   : > { %p505_p0 = pneg %p504_p13  ;;  %p511_p3 = por %p510_p2, %p509_p1 }
  0x9b   : > { %p512_p5 = pnand %p511_p3, %p505_p0 }
 0x106   : > { %v234_v10 = vpop.permute.xlu1 %233  ;;  %v231_v11 = vpop.permute.xlu0 %230 }
 0x107   : > { %v237_v12 = vsel %vm235_vm3, %v227_v6, %v231_v11 }
 0x108   : > { %v240_v13 = vsel %vm238_vm4, %v237_v12, %v234_v10 }
 0x109   : > { %v253_v14 = vsel %vm252_vm5, %v240_v13, 0 }
 0x10a   : > { %434 = vmatpush3.bf16.msra.mxu0 %v253_v14 }
 0x10d   : > { %436 = vmatmul.mubr.msk.bf16.vlgmr.msra.gmra.mrb[0].mxu0 %vm248_vm6, %v241_v15 }
 0x117   : > { %v246_v16 = vpop.permute.xlu1 %245 }
 0x1e0   : > { %v289_v17 = vpop.f32.mrb[0].mxu0 }
 0x1e1   : > { %v290_v18 = vadd.f32 %v289_v17, %v246_v16  ;;  %v437_v19 = vpop.f32.mrb[1].mxu0 }
 0x1e2   : > { %v292_v20 = vpop.f32.mrb[2].mxu0 }
 0x1e3   : > { %v295_v21 = vpack.c.bf16 %v290_v18, %v290_v18  ;;  %v438_v22 = vpop.f32.mrb[3].mxu0  ;;  %v299_v23 = vsel %vm298_vm7, %v290_v18, 0.0  ;;  %v302_v24 = vmul.f32 %v290_v18, %v290_v18 }
 0x1e4   : > { %300 = vadd.xlane.f32.xlu0 %v299_v23 }
 0x1e5   : > { %v303_v25 = vsel %vm298_vm7, %v302_v24, 0.0  ;;  %297 = vst.msk [vmem:[%s201_s24] sm:$0xf] %vm296_vm8, %v295_v21 }
 0x1e6   : > { %304 = vadd.xlane.f32.xlu1 %v303_v25 }
 0x1e7   : > { %515 = shalt.err (!%p512_p5)
}
 0x1e8   : > { %s516_s18 = scalar_lea.hbm %s689_s7, 64  ;;  %s520_s21 = scalar_lea.hbm %s738_s3, 128 }
 0x1e9   : > { %p517_p6 = scmp.ne.s32.totalorder %s689_s7, %s516_s18  ;;  %p521_p10 = scmp.lt.u32.totalorder %s689_s7, %s738_s3 }
 0x1ea   : > { %p522_p11 = scmp.lt.u32.totalorder %s520_s21, %s516_s18  ;;  %p524_p13 = scmp.lt.u32.totalorder %s516_s18, %s689_s7 }
 0x1eb   : > { %p518_p7 = pnand %p517_p6, %p654_p4 }
 0x1ec   : > { %p523_p12 = por %p522_p11, %p521_p10 }
 0x1ed   : > { %p519_p9 = pneg %p518_p7 }
 0x1ee   : > { %p525_p0 = por %p524_p13, %p523_p12 }
 0x1f0   : > { %p526_p1 = pnand %p525_p0, %p519_p9 }
 0x1f2   : > { %529 = shalt.err (!%p526_p1)
}
 0x1f3   : > { %439 = dma.vmem_to_hbm [thread:$0]  (%p654_p4), %s328_s30, 64, %s689_s7, %s310_s8   ;;  %vm307_vm9 = vcmask 15360  }
 0x1f4   : > { %s425_s26 = sshll.u32 %s671_s29, 3 }
 0x1f5   : > { %s215_s9 = scalar_lea.vmem %s739_s4, %s425_s26 }
 0x271   : > { %v301_v26 = vpop.xlane.xlu0 %300 }
 0x273   : > { %v305_v27 = vpop.xlane.xlu1 %304 }
 0x274   : > { %v306_v28 = vsel %vm222_vm1, %v301_v26, %v305_v27 }
 0x275   : > { %308 = vst.msk [vmem:[%s215_s9] sm:$0xff] %vm307_vm9, %v306_v28 }
 0x276 PF: > { %p445_p2 = scmp.ge.s32.totalorder %s580_s20, 2  ;;  %s342_s25 = sand.u32 1, %s560_s15  }
 0x277   : > { %s343_s30 = scalar_lea.sflag [#allocation3], %s342_s25 }
 0x278   : > { %p442_p3 = pnand %p445_p2, %p661_p8 }
 0x27a   : > { %555 = dma.done.wait (!%p442_p3), %s343_s30, 64  }
 0x27b   : > { %557 = vsyncadd (!%p442_p3), %s343_s30, 4294967232  ;;  %s18_s20 = sadd.s32 1, %s580_s20   ;;  %s742_s15 = smov %s564_s16 }
 0x27c   : > { %p15_p4 = scmp.ge.s32.totalorder %s18_s20, 4   ;;  %s743_s16 = smov %s568_s17 }
 0x27d   : > { %s744_s17 = smov %s667_s28  ;;  %s745_s18 = smov %s576_s19 }
 0x27e   : > { %s746_s19 = smov %s748_s23  ;;  %17 = sbr.rel (!%p15_p4) target bundleno = 4 (0x4), region = 79 }
 0x285   :  { %355 = vsyncpa [#allocation3], 1 }
 0x286   :  { %357 = vsyncpa [#allocation3 + $0x1], 1 }

</bundles_post_ra>
